<compile_context>
chip_gen: v7x
topology: tpu7x:2x2x1
jax: 0.10.0
libtpu: 0.0.40
codegen_flags: <defaults>
</compile_context>

<pallas_src>
import jax
import jax.numpy as jnp
import numpy as np
from jax.experimental import pallas as pl
from jax.experimental.pallas import tpu as pltpu


def _bias_affine_kernel(alpha_ref, beta_ref, x_ref, o_ref):
    # alpha_ref / beta_ref: (1,) f32 scalars in SMEM
    # x_ref / o_ref: (tile_rows, cols) blocks in VMEM
    alpha = alpha_ref[0]
    beta = beta_ref[0]
    y = x_ref[...].astype(jnp.float32) * alpha + beta
    o_ref[...] = y.astype(o_ref.dtype)


# Minimum sublane multiple per itemsize (f32 -> 8, bf16 -> 16, fp8 -> 32).
_SUBLANE = {4: 8, 2: 16, 1: 32}


def _device_tiling():
    """Per-generation (block_target_bytes, vmem_limit_bytes_or_None)."""
    try:
        kind = jax.devices()[0].device_kind.lower()
    except Exception:
        kind = ""
    if "v7" in kind:
        # v7x: ~3.2 TB/s HBM per TC -> bigger blocks hide the ~0.35us/step cost.
        # 6 MiB blocks -> 24 MiB double-buffered in+out; raise scoped VMEM
        # explicitly (64 MiB physical per TC).
        return 6 * 1024 * 1024, 48 * 1024 * 1024
    if "v6" in kind:
        # 4 MiB blocks -> 16 MiB double-buffered, fits the 32 MiB scoped default.
        return 4 * 1024 * 1024, None
    # v5e / unknown: 2 MiB blocks -> 8 MiB, fits the 16 MiB scoped default.
    return 2 * 1024 * 1024, None


def _affine_2d(x2, alpha_s, beta_s, *, donate=False):
    """y = alpha * x2 + beta for a 2-D array, tiled over rows."""
    rows, cols = x2.shape
    dtype = x2.dtype
    itemsize = dtype.itemsize
    sub = _SUBLANE.get(itemsize, 8)
    lane_padded = -(-cols // 128) * 128  # VMEM footprint of one row (lanes)
    block_bytes, vmem_limit = _device_tiling()

    target_rows = max(sub, (block_bytes // (lane_padded * itemsize)) // sub * sub)
    tile_rows = min(rows, target_rows)
    # Guarantee >=2 grid steps for multi-MiB inputs so both v7x TensorCores
    # get work (harmless single extra step on single-TC chips).
    if (tile_rows == rows and rows >= 2 * sub
            and rows * lane_padded * itemsize >= (2 << 20)):
        half = max(sub, ((rows + 1) // 2 + sub - 1) // sub * sub)
        tile_rows = min(tile_rows, half)
    grid = (pl.cdiv(rows, tile_rows),)

    cp_kwargs = dict(dimension_semantics=("parallel",))
    if vmem_limit is not None:
        cp_kwargs["vmem_limit_bytes"] = vmem_limit

    extra = {}
    if donate:
        extra["input_output_aliases"] = {2: 0}  # alias x2 -> output

    total = rows * cols
    return pl.pallas_call(
        _bias_affine_kernel,
        out_shape=jax.ShapeDtypeStruct((rows, cols), dtype),
        grid_spec=pltpu.PrefetchScalarGridSpec(
            num_scalar_prefetch=0,
            grid=grid,
            in_specs=[
                pl.BlockSpec(memory_space=pltpu.SMEM),            # alpha (1,) f32
                pl.BlockSpec(memory_space=pltpu.SMEM),            # beta  (1,) f32
                pl.BlockSpec((tile_rows, cols), lambda i: (i, 0)),
            ],
            out_specs=pl.BlockSpec((tile_rows, cols), lambda i: (i, 0)),
        ),
        compiler_params=pltpu.CompilerParams(**cp_kwargs),
        cost_estimate=pl.CostEstimate(
            flops=2 * total, transcendentals=0,
            bytes_accessed=2 * total * itemsize),
        **extra,
    )(alpha_s, beta_s, x2)


def _concrete_scalar(v):
    """Return v as a Python float if it is concrete (not a tracer), else None."""
    try:
        return float(np.asarray(v).reshape(()))
    except Exception:
        return None


def bias_layer(x, alpha, beta, *, donate_x=False):
    """Apply y = alpha * x + beta elementwise (BiasLayer.forward) on TPU."""
    orig_shape = x.shape
    dtype = x.dtype
    total = int(x.size)
    if total == 0:
        return x

    if not jnp.issubdtype(dtype, jnp.floating):
        # TODO(synk): non-float inputs follow jnp/torch float promotion outside the kernel.
        return (jnp.asarray(alpha, jnp.float32).reshape(()) * x
                + jnp.asarray(beta, jnp.float32).reshape(()))

    # ---- trace-time identity fast path (production init: alpha=1, beta=0) ----
    a_c, b_c = _concrete_scalar(alpha), _concrete_scalar(beta)
    if a_c == 1.0 and b_c == 0.0:
        return x

    alpha_s = jnp.asarray(alpha, jnp.float32).reshape((1,))
    beta_s = jnp.asarray(beta, jnp.float32).reshape((1,))
    itemsize = dtype.itemsize

    # Tiny inputs: per-call overhead dominates any kernel; plain jnp is best.
    if total < 128:
        return (alpha_s[0] * x.astype(jnp.float32) + beta_s[0]).astype(dtype)

    flat = x.reshape(-1)  # row-major reshape: free

    # ---- path 1: 128-divisible total -> lane-dense slab, zero extra copies ----
    if total % 128 == 0:
        lane = 512 if total % 512 == 0 else (256 if total % 256 == 0 else 128)
        y2 = _affine_2d(flat.reshape(total // lane, lane), alpha_s, beta_s,
                        donate=donate_x)
        return y2.reshape(orig_shape)

    # ---- path 2: wide natural trailing dim -> run on the natural 2-D view ----
    last = orig_shape[-1]
    if 128 <= last <= 16384:
        # Each block spans the full last dim, so every DMA is a contiguous HBM
        # chunk; only VMEM-side stores are partially masked (slack in a
        # DMA-bound kernel).  Zero pad/slice/concat copies.
        y2 = _affine_2d(x.reshape(total // last, last), alpha_s, beta_s,
                        donate=donate_x)
        return y2.reshape(orig_shape)

    # ---- path 3: narrow last dim, non-divisible total -> bulk kernel + jnp tail
    bulk = (total // 128) * 128
    lane = 512 if bulk % 512 == 0 else (256 if bulk % 256 == 0 else 128)
    y_bulk = _affine_2d(flat[:bulk].reshape(bulk // lane, lane), alpha_s, beta_s)
    y_tail = (alpha_s[0] * flat[bulk:].astype(jnp.float32) + beta_s[0]).astype(dtype)
    return jnp.concatenate([y_bulk.reshape(-1), y_tail]).reshape(orig_shape)


if __name__ == "__main__":
    key = jax.random.PRNGKey(0)

    # 1) Module-default parameters (alpha=1, beta=0): identity fast path.
    alpha0 = jnp.ones((1,), dtype=jnp.float32)
    beta0 = jnp.zeros((1,), dtype=jnp.float32)
    x1 = jax.random.normal(key, (8, 32), dtype=jnp.float32)   # logits: batch=8, classes=32
    y1 = jax.block_until_ready(bias_layer(x1, alpha0, beta0))
    assert y1.shape == x1.shape and y1.dtype == x1.dtype
    assert jnp.allclose(y1, alpha0[0] * x1 + beta0[0], atol=1e-6, rtol=1e-6)

    # 2) Non-trivial affine, 128-divisible total (256): lane-dense kernel path.
    a, b = jnp.float32(1.5), jnp.float32(-0.25)
    y2 = jax.block_until_ready(bias_layer(x1, a, b))
    assert y2.shape == x1.shape and y2.dtype == x1.dtype
    assert jnp.allclose(y2, a * x1 + b, atol=1e-6, rtol=1e-6)

    # 3) Non-divisible total with a narrow trailing dim (16*100=1600): bulk + tail path.
    x3 = jax.random.normal(jax.random.PRNGKey(1), (16, 100), dtype=jnp.float32)
    y3 = jax.block_until_ready(bias_layer(x3, a, b))
    assert y3.shape == x3.shape and y3.dtype == x3.dtype
    assert jnp.allclose(y3, a * x3 + b, atol=1e-6, rtol=1e-6)

    # 4) Non-divisible total, wide trailing dim (2,4,200): natural-view path.
    x4 = jax.random.normal(jax.random.PRNGKey(2), (2, 4, 200), dtype=jnp.float32)
    y4 = jax.block_until_ready(bias_layer(x4, a, b))
    assert y4.shape == x4.shape and y4.dtype == x4.dtype
    assert jnp.allclose(y4, a * x4 + b, atol=1e-6, rtol=1e-6)

    # 5) bf16 input on the lane-dense path (f32 compute inside the kernel).
    x5 = jax.random.normal(jax.random.PRNGKey(3), (32, 256), dtype=jnp.bfloat16)
    y5 = jax.block_until_ready(bias_layer(x5, 2.0, 1.0))
    ref5 = (jnp.float32(2.0) * x5.astype(jnp.float32) + 1.0).astype(jnp.bfloat16)
    assert y5.shape == x5.shape and y5.dtype == jnp.bfloat16
    assert jnp.allclose(y5.astype(jnp.float32), ref5.astype(jnp.float32),
                        atol=1e-2, rtol=1e-2)

    print("KERNEL_OK")
</pallas_src>

<mosaic_0001>
module attributes {stable_mosaic.version = 11 : i64} {
  func.func @_bias_affine_kernel(%arg0: i32, %arg1: memref<1xf32, #tpu.memory_space<smem>>, %arg2: memref<1xf32, #tpu.memory_space<smem>>, %arg3: memref<1x256xf32, #tpu.memory_space<vmem>>, %arg4: memref<1x256xf32, #tpu.memory_space<vmem>>) attributes {dimension_semantics = [#tpu.dimension_semantics<parallel>], iteration_bounds = array<i64: 1>, scalar_prefetch = 0 : i64, scratch_operands = 0 : i64, tpu.core_type = #tpu.core_type<tc>, window_params = [{transform_indices = @transform_0, window_bounds = array<i64: 1>}, {transform_indices = @transform_1, window_bounds = array<i64: 1>}, {transform_indices = @transform_2, window_bounds = array<i64: 1, 256>}, {transform_indices = @transform_3, window_bounds = array<i64: 1, 256>}]} {
    %c0 = arith.constant 0 : index
    %0 = memref.load %arg1[%c0] : memref<1xf32, #tpu.memory_space<smem>>
    %c0_0 = arith.constant 0 : index
    %1 = memref.load %arg2[%c0_0] : memref<1xf32, #tpu.memory_space<smem>>
    %c0_1 = arith.constant 0 : index
    %c0_2 = arith.constant 0 : index
    %2 = vector.load %arg3[%c0_1, %c0_2] : memref<1x256xf32, #tpu.memory_space<vmem>>, vector<1x256xf32>
    %3 = vector.broadcast %0 : f32 to vector<1x256xf32>
    %4 = arith.mulf %2, %3 : vector<1x256xf32>
    %5 = vector.broadcast %1 : f32 to vector<1x256xf32>
    %6 = arith.addf %4, %5 : vector<1x256xf32>
    %c0_3 = arith.constant 0 : index
    %c0_4 = arith.constant 0 : index
    %7 = vector.load %arg4[%c0_3, %c0_4] : memref<1x256xf32, #tpu.memory_space<vmem>>, vector<1x256xf32>
    tpu.vector_store %arg4[%c0_3, %c0_4], %6 {strides = array<i32>} : memref<1x256xf32, #tpu.memory_space<vmem>>, vector<1x256xf32>,
    return
  }
  func.func @transform_0(%arg0: i32) -> i32 {
    %c0_i32 = arith.constant 0 : i32
    %c0_i32_0 = arith.constant 0 : i32
    return %c0_i32 : i32
  }
  func.func @transform_1(%arg0: i32) -> i32 {
    %c0_i32 = arith.constant 0 : i32
    %c0_i32_0 = arith.constant 0 : i32
    return %c0_i32 : i32
  }
  func.func @transform_2(%arg0: i32) -> (i32, i32) {
    %c0_i32 = arith.constant 0 : i32
    %c0_i32_0 = arith.constant 0 : i32
    return %arg0, %c0_i32 : i32, i32
  }
  func.func @transform_3(%arg0: i32) -> (i32, i32) {
    %c0_i32 = arith.constant 0 : i32
    %c0_i32_0 = arith.constant 0 : i32
    return %arg0, %c0_i32 : i32, i32
  }
}

</mosaic_0001>

<bundles_post_ra>
// kernel: tpu_custom_call.1
= control target key start
LH: loop header
LB: loop body
LE: loop exit
PB: predicated region body
PF: predicated region fallthrough
CT: control target
= control target key end

     0   :  { %v24_v3 = vlaneseq  ;;  %s110_s0 = inlined_call_operand.<no memory space> [shape: f32[1], index: 0, kind: input, shape index: {}]   ;;  %s111_s1 = inlined_call_operand.<no memory space> [shape: f32[1], index: 1, kind: input, shape index: {}]   ;;  %s112_s2 = inlined_call_operand.vmem [shape: f32[1,256], index: 2, kind: input, shape index: {}]   ;;  %s113_s3 = inlined_call_operand.hbm [shape: f32[1,256], index: 3, kind: output, shape index: {}]  }
   0x1   :  { %v19_v0 = vld [vmem:[%s112_s2] sm:$0x3]  ;;  %v20_v1 = vstv %s110_s0  ;;  %v22_v2 = vstv %s111_s1 }
   0x2   :  { %10 = vsyncpa [#allocation5], 0  ;;  %v21_v4 = vmul.f32 %v20_v1, %v19_v0  ;;  %s68_s18 = smov [#allocation4]   ;;  %vm26_vm0 = vcmp.lt.s32.totalorder %v24_v3, 256 }
   0x3   :  { %s35_s19 = sshll.u32 %s68_s18, 4  ;;  %s36_s19 = int_to_ptr.vmem [resolvable:$true] %s35_s19 }
   0x4   :  { %v23_v5 = vadd.f32 %v22_v2, %v21_v4  ;;  %s44_s20 = scalar_lea.vmem %s36_s19, 32  ;;  %p49_p1 = scmp.lt.s32.totalorder %s36_s19, %s36_s19 }
   0x5   :  { %p45_p0 = scmp.ne.s32.totalorder %s36_s19, %s44_s20  ;;  %p50_p2 = scmp.lt.s32.totalorder %s44_s20, %s44_s20 }
   0x6   :  { %28 = vst.msk [vmem:[#allocation4] sm:$0x3] %vm26_vm0, %v23_v5 }
   0x7   :  { %p51_p3 = por %p50_p2, %p49_p1 }
   0x9   :  { %p52_p4 = pnand %p51_p3, %p45_p0 }
   0xb   :  { %55 = shalt.err (!%p52_p4)
}
   0xc   :  { %s56_s1 = scalar_lea.hbm %s113_s3, 32 }
   0xd   :  { %p57_p5 = scmp.ne.s32.totalorder %s113_s3, %s56_s1  ;;  %p60_p6 = scmp.lt.u32.totalorder %s56_s1, %s113_s3 }
   0xf   :  { %p62_p7 = pnand %p60_p6, %p57_p5 }
  0x11   :  { %65 = shalt.err (!%p62_p7)
}
  0x12   :  { %38 = dma.vmem_to_hbm [thread:$0]  %s36_s19, 32, %s113_s3, [#allocation5]  }
  0x13   :  { %66 = dma.done.wait [#allocation5], 32  }
  0x14   :  { %67 = vsyncadd [#allocation5], 4294967264 }
  0x15   :  { %42 = vsyncpa [#allocation5], 1 }

</bundles_post_ra>
